<compile_context>
chip_gen: v7x
topology: tpu7x:2x2x1
jax: 0.10.0
libtpu: 0.0.40
codegen_flags: <defaults>
</compile_context>

<pallas_src>
import math

import jax
import jax.numpy as jnp
from jax.experimental import pallas as pl
from jax.experimental.pallas import tpu as pltpu

LANE = 128
SUBLANE = 8


def _round_up(n, m):
    return ((n + m - 1) // m) * m


def make_critic_kernel(state_dim, hidden):
    """relu(x @ W1 + b1) @ W2 + b2, entirely on the VPU/XLU.

    Packed-parameter tile layout (rows x lanes, f32, zero padded):
      rows [0, state_dim)   : W1  (state_dim, hidden)
      row   state_dim       : b1  (hidden,)
      row   state_dim + 1   : W2  (hidden,)  (stored as a row)
      row   state_dim + 2   : b2  at lane 0
    """

    def kernel(x_ref, p_ref, o_ref):
        x = x_ref[...]                                  # (TILE_B, state_dim)
        p = p_ref[...]                                  # (rows, lanes)

        # fc1: K=state_dim broadcast FMAs on the VPU (skip the padded MXU pass).
        h = p[state_dim:state_dim + 1, :]               # b1, (1, lanes)
        for k in range(state_dim):                      # unrolled at trace time
            h = h + x[:, k:k + 1] * p[k:k + 1, :]       # (TILE_B,1)*(1,lanes)
        h = jnp.maximum(h, 0.0)                         # ReLU; padded lanes -> 0

        # fc2: VPU multiply + lane reduce (avoids lane-sparse (., 1) MXU op).
        w2_row = p[state_dim + 1:state_dim + 2, :]      # (1, lanes)
        out = jnp.sum(h * w2_row, axis=-1, keepdims=True)   # (TILE_B, 1)
        o_ref[...] = out + p[state_dim + 2:state_dim + 3, 0:1]   # + b2

    return kernel


def pack_params(w1, b1, w2, b2):
    """Pack (W1, b1, W2, b2) into one zero-padded f32 tile (single DMA)."""
    state_dim, hidden = w1.shape
    rows = _round_up(state_dim + 3, SUBLANE)            # 8 for CartPole
    lanes = _round_up(hidden, LANE)                     # 128 for hidden=24
    p = jnp.zeros((rows, lanes), jnp.float32)
    p = p.at[:state_dim, :hidden].set(w1.astype(jnp.float32))
    p = p.at[state_dim, :hidden].set(b1.reshape(-1).astype(jnp.float32))
    p = p.at[state_dim + 1, :hidden].set(w2.reshape(-1).astype(jnp.float32))
    p = p.at[state_dim + 2, 0].set(jnp.reshape(b2, ()).astype(jnp.float32))
    return p


def critic_forward(x, w1, b1, w2, b2, *, tile_b=512):
    """x: (B, state_dim) f32 -> (B, 1) f32.  Matches Linear/ReLU/Linear."""
    B, state_dim = x.shape
    hidden = w1.shape[1]
    params = pack_params(w1, b1, w2, b2)

    # Batch tiling: whole batch if small, else TILE_B-row tiles streamed
    # through VMEM with BlockSpec auto-pipelining.  tile_b=512 keeps
    # double-buffered f32 tiles far under v7x's 64 MiB VMEM.
    tb = B if B <= tile_b else tile_b
    if B % tb != 0:
        tb = B                                          # ragged batch: one tile
    grid = (B // tb,)

    kernel = make_critic_kernel(state_dim, hidden)

    flops = 2 * B * (state_dim * hidden + hidden)
    bytes_accessed = (x.size + params.size + B) * 4

    return pl.pallas_call(
        kernel,
        out_shape=jax.ShapeDtypeStruct((B, 1), jnp.float32),
        grid=grid,
        in_specs=[
            pl.BlockSpec((tb, state_dim), lambda i: (i, 0)),   # x batch tile
            pl.BlockSpec(params.shape, lambda i: (0, 0)),      # packed params
        ],
        out_specs=pl.BlockSpec((tb, 1), lambda i: (i, 0)),
        compiler_params=pltpu.CompilerParams(
            dimension_semantics=("parallel",),                 # 2 TCs on v7x
        ),
        cost_estimate=pl.CostEstimate(
            flops=flops, transcendentals=0, bytes_accessed=bytes_accessed),
    )(x, params)


def xavier_uniform(key, fan_in, fan_out):
    # Matches torch.nn.init.xavier_uniform_: U(-a, a), a = sqrt(6/(fan_in+fan_out)).
    a = math.sqrt(6.0 / (fan_in + fan_out))
    # PyTorch weight shape is (out, in); generate then transpose to (in, out)
    # so the kernel computes x @ W  ==  x @ weight.T (nn.Linear semantics).
    w = jax.random.uniform(key, (fan_out, fan_in), jnp.float32, minval=-a, maxval=a)
    return w.T


def linear_bias(key, fan_in, fan_out):
    # nn.Linear default bias init: U(-1/sqrt(fan_in), 1/sqrt(fan_in)).
    bound = 1.0 / math.sqrt(fan_in)
    return jax.random.uniform(key, (fan_out,), jnp.float32, minval=-bound, maxval=bound)


if __name__ == "__main__":
    # CartPole-like problem: state_shape = (4,), hidden = 24, output = 1
    state_dim = 4
    hidden = 24
    batch = 8

    key = jax.random.PRNGKey(0)
    k_x, k_w1, k_b1, k_w2, k_b2 = jax.random.split(key, 5)

    x = jax.random.normal(k_x, (batch, state_dim), jnp.float32)

    w1 = xavier_uniform(k_w1, state_dim, hidden)    # (4, 24)
    b1 = linear_bias(k_b1, state_dim, hidden)       # (24,)
    w2 = xavier_uniform(k_w2, hidden, 1)            # (24, 1)
    b2 = linear_bias(k_b2, hidden, 1)               # (1,)

    out = critic_forward(x, w1, b1, w2, b2)
    out = jax.block_until_ready(out)

    # Pure-JAX reference (highest precision so the check is not dominated by
    # XLA's default reduced-precision f32 matmul passes).
    h_ref = jnp.maximum(
        jnp.dot(x, w1, precision=jax.lax.Precision.HIGHEST) + b1.reshape(1, -1), 0.0)
    ref = jnp.dot(h_ref, w2, precision=jax.lax.Precision.HIGHEST) + b2.reshape(1, 1)

    assert out.shape == (batch, 1)
    assert jnp.allclose(out, ref, atol=1e-5, rtol=1e-5)

    print("KERNEL_OK")
</pallas_src>

<mosaic_0001>
module attributes {stable_mosaic.version = 11 : i64} {
  func.func @kernel(%arg0: i32, %arg1: memref<8x4xf32, #tpu.memory_space<vmem>>, %arg2: memref<8x128xf32, #tpu.memory_space<vmem>>, %arg3: memref<8x1xf32, #tpu.memory_space<vmem>>) attributes {dimension_semantics = [#tpu.dimension_semantics<parallel>], iteration_bounds = array<i64: 1>, scalar_prefetch = 0 : i64, scratch_operands = 0 : i64, tpu.core_type = #tpu.core_type<tc>, window_params = [{transform_indices = @transform_0, window_bounds = array<i64: 8, 4>}, {pipeline_mode = #tpu.pipeline_mode<synchronous>, transform_indices = @transform_1, window_bounds = array<i64: 8, 128>}, {transform_indices = @transform_2, window_bounds = array<i64: 8, 1>}]} {
    %c0 = arith.constant 0 : index
    %c0_0 = arith.constant 0 : index
    %0 = vector.load %arg1[%c0, %c0_0] : memref<8x4xf32, #tpu.memory_space<vmem>>, vector<8x4xf32>
    %c0_1 = arith.constant 0 : index
    %c0_2 = arith.constant 0 : index
    %1 = vector.load %arg2[%c0_1, %c0_2] : memref<8x128xf32, #tpu.memory_space<vmem>>, vector<8x128xf32>
    %2 = vector.extract_strided_slice %1 {offsets = [4, 0], sizes = [1, 128], strides = [1, 1]} : vector<8x128xf32> to vector<1x128xf32>
    %3 = vector.extract_strided_slice %0 {offsets = [0, 0], sizes = [8, 1], strides = [1, 1]} : vector<8x4xf32> to vector<8x1xf32>
    %4 = vector.extract_strided_slice %1 {offsets = [0, 0], sizes = [1, 128], strides = [1, 1]} : vector<8x128xf32> to vector<1x128xf32>
    %5 = vector.broadcast %3 : vector<8x1xf32> to vector<8x128xf32>
    %6 = vector.broadcast %4 : vector<1x128xf32> to vector<8x128xf32>
    %7 = arith.mulf %5, %6 : vector<8x128xf32>
    %8 = vector.broadcast %2 : vector<1x128xf32> to vector<8x128xf32>
    %9 = arith.addf %8, %7 : vector<8x128xf32>
    %10 = vector.extract_strided_slice %0 {offsets = [0, 1], sizes = [8, 1], strides = [1, 1]} : vector<8x4xf32> to vector<8x1xf32>
    %11 = vector.extract_strided_slice %1 {offsets = [1, 0], sizes = [1, 128], strides = [1, 1]} : vector<8x128xf32> to vector<1x128xf32>
    %12 = vector.broadcast %10 : vector<8x1xf32> to vector<8x128xf32>
    %13 = vector.broadcast %11 : vector<1x128xf32> to vector<8x128xf32>
    %14 = arith.mulf %12, %13 : vector<8x128xf32>
    %15 = arith.addf %9, %14 : vector<8x128xf32>
    %16 = vector.extract_strided_slice %0 {offsets = [0, 2], sizes = [8, 1], strides = [1, 1]} : vector<8x4xf32> to vector<8x1xf32>
    %17 = vector.extract_strided_slice %1 {offsets = [2, 0], sizes = [1, 128], strides = [1, 1]} : vector<8x128xf32> to vector<1x128xf32>
    %18 = vector.broadcast %16 : vector<8x1xf32> to vector<8x128xf32>
    %19 = vector.broadcast %17 : vector<1x128xf32> to vector<8x128xf32>
    %20 = arith.mulf %18, %19 : vector<8x128xf32>
    %21 = arith.addf %15, %20 : vector<8x128xf32>
    %22 = vector.extract_strided_slice %0 {offsets = [0, 3], sizes = [8, 1], strides = [1, 1]} : vector<8x4xf32> to vector<8x1xf32>
    %23 = vector.extract_strided_slice %1 {offsets = [3, 0], sizes = [1, 128], strides = [1, 1]} : vector<8x128xf32> to vector<1x128xf32>
    %24 = vector.broadcast %22 : vector<8x1xf32> to vector<8x128xf32>
    %25 = vector.broadcast %23 : vector<1x128xf32> to vector<8x128xf32>
    %26 = arith.mulf %24, %25 : vector<8x128xf32>
    %27 = arith.addf %21, %26 : vector<8x128xf32>
    %cst = arith.constant 0.000000e+00 : f32
    %28 = vector.broadcast %cst : f32 to vector<8x128xf32>
    %29 = arith.maximumf %27, %28 : vector<8x128xf32>
    %30 = vector.extract_strided_slice %1 {offsets = [5, 0], sizes = [1, 128], strides = [1, 1]} : vector<8x128xf32> to vector<1x128xf32>
    %31 = vector.broadcast %30 : vector<1x128xf32> to vector<8x128xf32>
    %32 = arith.mulf %29, %31 : vector<8x128xf32>
    %cst_3 = arith.constant dense<0.000000e+00> : vector<8xf32>
    %33 = vector.multi_reduction <add>, %32, %cst_3 [1] : vector<8x128xf32> to vector<8xf32>
    %34 = vector.shape_cast %33 : vector<8xf32> to vector<8x1xf32>
    %35 = vector.extract_strided_slice %1 {offsets = [6, 0], sizes = [1, 1], strides = [1, 1]} : vector<8x128xf32> to vector<1x1xf32>
    %36 = vector.broadcast %35 : vector<1x1xf32> to vector<8x1xf32>
    %37 = arith.addf %34, %36 : vector<8x1xf32>
    %c0_4 = arith.constant 0 : index
    %c0_5 = arith.constant 0 : index
    %38 = vector.load %arg3[%c0_4, %c0_5] : memref<8x1xf32, #tpu.memory_space<vmem>>, vector<8x1xf32>
    tpu.vector_store %arg3[%c0_4, %c0_5], %37 {strides = array<i32>} : memref<8x1xf32, #tpu.memory_space<vmem>>, vector<8x1xf32>,
    return
  }
  func.func @transform_0(%arg0: i32) -> (i32, i32) {
    %c0_i32 = arith.constant 0 : i32
    %c0_i32_0 = arith.constant 0 : i32
    return %arg0, %c0_i32 : i32, i32
  }
  func.func @transform_1(%arg0: i32) -> (i32, i32) {
    %c0_i32 = arith.constant 0 : i32
    %c0_i32_0 = arith.constant 0 : i32
    %c0_i32_1 = arith.constant 0 : i32
    return %c0_i32, %c0_i32_0 : i32, i32
  }
  func.func @transform_2(%arg0: i32) -> (i32, i32) {
    %c0_i32 = arith.constant 0 : i32
    %c0_i32_0 = arith.constant 0 : i32
    return %arg0, %c0_i32 : i32, i32
  }
}

</mosaic_0001>

<bundles_post_ra>
// kernel: tpu_custom_call.1
= control target key start
LH: loop header
LB: loop body
LE: loop exit
PB: predicated region body
PF: predicated region fallthrough
CT: control target
= control target key end

     0   :  { %v86_v0 = vmov 0   ;;  %v87_v2 = vmov 2   ;;  %v88_v3 = vmov 1   ;;  %v89_v4 = vmov 3   ;;  %s114_s0 = inlined_call_operand.vmem [shape: f32[8,4], index: 0, kind: input, shape index: {}]   ;;  %s115_s1 = inlined_call_operand.vmem [shape: f32[8,128], index: 1, kind: input, shape index: {}]   ;;  %s116_s2 = inlined_call_operand.vmem [shape: f32[8,1], index: 2, kind: output, shape index: {}]  }
   0x1   :  { %81 = vset.pattern.permute.xlu0 %v86_v0  ;;  %v11_v1 = vld [vmem:[%s114_s0] sm:$0xff]  ;;  %83 = vset.pattern.permute.xlu1 %v87_v2  ;;  %v18_v5 = vlaneseq  ;;  %vm71_vm0 = vcmask 7168  }
   0x2   :  { %15 = vperm.xlu0 %81, %v11_v1   ;;  %39 = vperm.xlu1 %83, %v11_v1   ;;  %v12_v8 = vld [vmem:[%s115_s1] sm:$0xff] }
   0x3   :  { %v19_v6 = vshrl.u32 %v18_v5, 7 }
   0x5   :  { %v68_v7 = vsub.s32 6, %v19_v6  ;;  %v20_v10 = vsub.s32 0, %v19_v6  ;;  %v25_v12 = vsub.s32 4, %v19_v6  ;;  %v34_v13 = vsub.s32 1, %v19_v6 }
   0x6   :  { %82 = vset.pattern.permute.xlu0 %v88_v3  ;;  %84 = vset.pattern.permute.xlu1 %v89_v4  ;;  %v44_v15 = vsub.s32 2, %v19_v6  ;;  %v54_v17 = vsub.s32 3, %v19_v6  ;;  %v61_v30 = vsub.s32 5, %v19_v6 }
   0x7   :  { %29 = vperm.xlu0 %82, %v11_v1   ;;  %49 = vperm.xlu1 %84, %v11_v1   ;;  %v69_v9 = vrot.slane %v12_v8, %v68_v7  ;;  %v21_v11 = vrot.slane %v12_v8, %v20_v10  ;;  %v26_v18 = vrot.slane %v12_v8, %v25_v12 }
   0x8   :  { %v35_v20 = vrot.slane %v12_v8, %v34_v13  ;;  %v45_v21 = vrot.slane %v12_v8, %v44_v15  ;;  %v55_v22 = vrot.slane %v12_v8, %v54_v17  ;;  %v62_v33 = vrot.slane %v12_v8, %v61_v30 }
   0xb   :  { %85 = vset.pattern.permute.xlu0 %v89_v4 }
  0x81   :  { %v16_v14 = vpop.permute.xlu0 %15  ;;  %v40_v16 = vpop.permute.xlu1 %39 }
  0x82   :  { %v22_v19 = vmul.f32 %v21_v11, %v16_v14  ;;  %v46_v27 = vmul.f32 %v45_v21, %v40_v16 }
  0x84   :  { %v27_v25 = vadd.f32 %v26_v18, %v22_v19 }
  0x86   :  { %v30_v23 = vpop.permute.xlu0 %29  ;;  %v50_v24 = vpop.permute.xlu1 %49 }
  0x87   :  { %v36_v26 = vmul.f32 %v35_v20, %v30_v23  ;;  %v56_v29 = vmul.f32 %v55_v22, %v50_v24 }
  0x89   :  { %v37_v28 = vadd.f32 %v36_v26, %v27_v25 }
  0x8b   :  { %v47_v31 = vadd.f32 %v46_v27, %v37_v28 }
  0x8d   :  { %v57_v32 = vadd.f32 %v56_v29, %v47_v31 }
  0x8f   :  { %v58_v34 = vmax.f32 %v57_v32, 0.0 }
  0x91   :  { %v63_v35 = vmul.f32 %v62_v33, %v58_v34 }
  0x93   :  { %64 = vadd.xlane.f32.xlu1 %v63_v35 }
 0x120   :  { %v65_v36 = vpop.xlane.xlu1 %64 }
 0x121   :  { %v70_v37 = vadd.f32 %v69_v9, %v65_v36 }
 0x123   :  { %72 = vst.msk [vmem:[%s116_s2] sm:$0xff] %vm71_vm0, %v70_v37 }

</bundles_post_ra>
